<compile_context>
chip_gen: v7x
topology: tpu7x:2x2x1
jax: 0.10.0
libtpu: 0.0.40
codegen_flags: <defaults>
</compile_context>

<pallas_src>
import functools

import jax
import jax.numpy as jnp
from jax import lax
from jax.experimental import pallas as pl
from jax.experimental.pallas import tpu as pltpu


def _round_up(x, m):
    return (x + m - 1) // m * m


def _conv3x3_relu_kernel(x_ref, w_ref, b_ref, o_ref, *, H, W, cin_pad, compute_dtype):
    """One grid step = Nb batch elements.

    x_ref: (Nb, Cin,  H*W)       input; channels on sublanes, flat spatial on lanes
    w_ref: (3, Cout, 3*Cin_p)    folded weights, w[kh, co, kw*Cin_p + ci]
    b_ref: (Cout, 1)             bias
    o_ref: (Nb, Cout, H*W)       output
    """
    HW = H * W
    nb, cin, _ = x_ref.shape
    cout = o_ref.shape[1]

    # 0/1 edge masks realizing the conv's zero padding (built in-kernel, VPU-cheap).
    pos = lax.broadcasted_iota(jnp.int32, (1, HW), 1)
    col = pos % W
    m_top = (pos >= W).astype(jnp.float32)            # tap reads row h-1: invalid at h == 0
    m_bot = (pos < (H - 1) * W).astype(jnp.float32)   # tap reads row h+1: invalid at h == H-1
    m_lft = (col > 0).astype(jnp.float32)             # tap reads col w-1: invalid at w == 0
    m_rgt = (col < W - 1).astype(jnp.float32)         # tap reads col w+1: invalid at w == W-1

    def tap_mask(kh, kw):
        m = None
        if kh == 0:
            m = m_top
        elif kh == 2:
            m = m_bot
        if kw == 0:
            m = m_lft if m is None else m * m_lft
        elif kw == 2:
            m = m_rgt if m is None else m * m_rgt
        return m

    # Hoisted once per grid step (JAX does not CSE broadcasts).
    masks = [[tap_mask(kh, kw) for kw in range(3)] for kh in range(3)]

    w_all = w_ref[...].astype(compute_dtype)          # (3, Cout, 3*Cin_p), MXU dtype
    bias = b_ref[...].astype(jnp.float32)             # (Cout, 1)
    pad_rows = cin_pad - cin

    # Short static batch loop; weights/bias/masks stay live across it.
    for b in range(nb):
        x = x_ref[b]                                  # (Cin, HW) f32
        if pad_rows:
            # sublane-align the channel axis so tap concatenation never repacks.
            x = jnp.concatenate([x, jnp.zeros((pad_rows, HW), x.dtype)], axis=0)

        acc = jnp.zeros((cout, HW), jnp.float32)
        for kh in range(3):
            taps = []
            for kw in range(3):
                # value needed at flat position p = h*W + w is x_flat[p + off]
                off = (kh - 1) * W + (kw - 1)
                xs = x if off == 0 else jnp.roll(x, shift=-off, axis=1)
                m = masks[kh][kw]
                if m is not None:
                    # zero contributions from outside the image (exactly the conv's
                    # zero padding; every roll wrap-around lane is also masked).
                    xs = xs * m
                taps.append(xs.astype(compute_dtype))
            xcol = jnp.concatenate(taps, axis=0)      # (3*Cin_p, HW), sublane-aligned
            acc = acc + jnp.dot(w_all[kh], xcol,
                                preferred_element_type=jnp.float32)

        acc = acc + bias                              # (Cout, 1) broadcasts over lanes
        o_ref[b] = jnp.maximum(acc, 0.0).astype(o_ref.dtype)


def dimension_transform_block_pre(x_nchw, weight_oihw, bias, *,
                                  compute_dtype=jnp.bfloat16):
    """Conv2d(3x3, stride=1, pad=1, bias) + ReLU, NCHW in / NCHW out.

    Args:
      x_nchw:      (N, Cin, H, W)    float32
      weight_oihw: (Cout, Cin, 3, 3) float32 (PyTorch OIHW layout)
      bias:        (Cout,)           float32
      compute_dtype: MXU operand dtype (bf16 default; f32 accumulation always).
    """
    N, Cin, H, W = x_nchw.shape
    Cout = weight_oihw.shape[0]
    HW = H * W
    Cin_p = _round_up(Cin, 8)

    x_flat = x_nchw.reshape(N, Cin, HW)                       # metadata-only

    # Fold weights: (Cout,Cin,3,3) -> w[kh, co, kw*Cin_p + ci]; tiny tensor.
    w = jnp.transpose(weight_oihw, (2, 0, 3, 1))              # (3, Cout, 3, Cin)
    if Cin_p != Cin:
        w = jnp.pad(w, ((0, 0), (0, 0), (0, 0), (0, Cin_p - Cin)))
    w_mat = w.reshape(3, Cout, 3 * Cin_p)
    b2d = bias.reshape(Cout, 1)

    # --- images per grid step + VMEM budget derived from actual block sizes ----
    itemsize = 4
    cd_size = jnp.dtype(compute_dtype).itemsize
    per_img_io = (Cin + Cout) * HW * itemsize                  # x block + out block
    per_img_tmp = HW * (Cin_p * itemsize                       # padded input copy
                        + 2 * 3 * Cin_p * cd_size              # live taps + xcol
                        + Cout * itemsize)                     # f32 accumulator
    const_bytes = 2 * (3 * Cout * 3 * Cin_p + Cout) * itemsize + (1 << 20)
    budget = 24 * 1024 * 1024                                  # conservative (v7x scoped)
    nb = 1
    for cand in range(min(N, 8), 0, -1):
        if N % cand == 0 and cand * (2 * per_img_io + per_img_tmp) + const_bytes <= budget:
            nb = cand
            break
    vmem_needed = nb * (2 * per_img_io + per_img_tmp) + const_bytes
    vmem_limit = int(min(max(2 * vmem_needed, 16 * 1024 * 1024), 64 * 1024 * 1024))

    kernel = functools.partial(_conv3x3_relu_kernel, H=H, W=W,
                               cin_pad=Cin_p, compute_dtype=compute_dtype)

    flops = 2 * N * HW * Cin_p * Cout * 9 + 4 * N * HW * Cout
    bytes_accessed = itemsize * (N * Cin * HW + N * Cout * HW
                                 + 3 * Cout * 3 * Cin_p + Cout)

    out_flat = pl.pallas_call(
        kernel,
        out_shape=jax.ShapeDtypeStruct((N, Cout, HW), x_nchw.dtype),
        grid_spec=pltpu.PrefetchScalarGridSpec(
            num_scalar_prefetch=0,
            grid=(N // nb,),
            in_specs=[
                pl.BlockSpec((nb, Cin, HW), lambda n: (n, 0, 0)),
                pl.BlockSpec((3, Cout, 3 * Cin_p), lambda n: (0, 0, 0)),
                pl.BlockSpec((Cout, 1), lambda n: (0, 0)),
            ],
            out_specs=pl.BlockSpec((nb, Cout, HW), lambda n: (n, 0, 0)),
        ),
        compiler_params=pltpu.CompilerParams(
            dimension_semantics=("parallel",),
            vmem_limit_bytes=vmem_limit,
        ),
        cost_estimate=pl.CostEstimate(flops=flops, transcendentals=0,
                                      bytes_accessed=bytes_accessed),
    )(x_flat, w_mat, b2d)

    return out_flat.reshape(N, Cout, H, W)                     # metadata-only


def _reference(x_nchw, weight_oihw, bias):
    """Pure-JAX reference (lax conv) matching PyTorch Conv2d + ReLU."""
    y = lax.conv_general_dilated(
        x_nchw, weight_oihw,
        window_strides=(1, 1), padding=((1, 1), (1, 1)),
        dimension_numbers=("NCHW", "OIHW", "NCHW"),
    )
    y = y + bias.reshape(1, -1, 1, 1)
    return jnp.maximum(y, 0.0)


if __name__ == "__main__":
    key = jax.random.PRNGKey(0)
    k_x, k_w, k_b = jax.random.split(key, 3)

    N, Cin, Cout, H, W = 2, 4, 8, 16, 16

    x = jax.random.normal(k_x, (N, Cin, H, W), dtype=jnp.float32)
    fan_in = Cin * 3 * 3
    bound = 1.0 / (fan_in ** 0.5)
    weight = jax.random.uniform(
        k_w, (Cout, Cin, 3, 3), minval=-bound, maxval=bound, dtype=jnp.float32)
    bias = jax.random.uniform(
        k_b, (Cout,), minval=-bound, maxval=bound, dtype=jnp.float32)

    ref = _reference(x, weight, bias)

    # Exactness check with f32 MXU operands.
    out_f32 = jax.jit(functools.partial(
        dimension_transform_block_pre, compute_dtype=jnp.float32))(x, weight, bias)
    out_f32 = jax.block_until_ready(out_f32)
    assert out_f32.shape == (N, Cout, H, W)
    assert jnp.allclose(out_f32, ref, atol=1e-5, rtol=1e-5), "f32 path mismatch vs reference"

    # Default fast path: bf16 MXU operands, f32 accumulation.
    out = jax.jit(dimension_transform_block_pre)(x, weight, bias)
    out = jax.block_until_ready(out)
    assert out.shape == (N, Cout, H, W)
    assert jnp.allclose(out, ref, atol=5e-2, rtol=5e-2), "bf16 path mismatch vs reference"

    print("KERNEL_OK")
</pallas_src>

<mosaic_0001>
module attributes {stable_mosaic.version = 11 : i64} {
  func.func @_conv3x3_relu_kernel(%arg0: i32, %arg1: memref<2x4x256xf32, #tpu.memory_space<vmem>>, %arg2: memref<3x8x24xf32, #tpu.memory_space<vmem>>, %arg3: memref<8x1xf32, #tpu.memory_space<vmem>>, %arg4: memref<2x8x256xf32, #tpu.memory_space<vmem>>) attributes {dimension_semantics = [#tpu.dimension_semantics<parallel>], iteration_bounds = array<i64: 1>, scalar_prefetch = 0 : i64, scratch_operands = 0 : i64, tpu.core_type = #tpu.core_type<tc>, window_params = [{transform_indices = @transform_0, window_bounds = array<i64: 2, 4, 256>}, {pipeline_mode = #tpu.pipeline_mode<synchronous>, transform_indices = @transform_1, window_bounds = array<i64: 3, 8, 24>}, {pipeline_mode = #tpu.pipeline_mode<synchronous>, transform_indices = @transform_2, window_bounds = array<i64: 8, 1>}, {transform_indices = @transform_3, window_bounds = array<i64: 2, 8, 256>}]} {
    %0 = tpu.iota {dimensions = array<i32: 1>} : vector<1x256xi32>
    %c16_i32 = arith.constant 16 : i32
    %c0_i32 = arith.constant 0 : i32
    %1 = arith.cmpi eq, %c16_i32, %c0_i32 : i32
    %c1_i32 = arith.constant 1 : i32
    %2 = arith.select %1, %c1_i32, %c16_i32 : i32
    %3 = vector.broadcast %2 : i32 to vector<1x256xi32>
    %4 = arith.remsi %0, %3 : vector<1x256xi32>
    %c0_i32_0 = arith.constant 0 : i32
    %5 = vector.broadcast %c0_i32_0 : i32 to vector<1x256xi32>
    %6 = arith.cmpi ne, %4, %5 : vector<1x256xi32>
    %c0_i32_1 = arith.constant 0 : i32
    %7 = vector.broadcast %c0_i32_1 : i32 to vector<1x256xi32>
    %8 = arith.cmpi slt, %4, %7 : vector<1x256xi32>
    %c0_i32_2 = arith.constant 0 : i32
    %9 = arith.cmpi slt, %2, %c0_i32_2 : i32
    %10 = vector.broadcast %9 : i1 to vector<1x256xi1>
    %11 = vector.broadcast %10 : vector<1x256xi1> to vector<1x256xi1>
    %12 = arith.xori %8, %11 : vector<1x256xi1>
    %13 = arith.andi %12, %6 : vector<1x256xi1>
    %14 = vector.broadcast %2 : i32 to vector<1x256xi32>
    %15 = arith.addi %4, %14 : vector<1x256xi32>
    %16 = arith.select %13, %15, %4 : vector<1x256xi1>, vector<1x256xi32>
    %c16_i32_3 = arith.constant 16 : i32
    %17 = vector.broadcast %c16_i32_3 : i32 to vector<1x256xi32>
    %18 = arith.cmpi sge, %0, %17 : vector<1x256xi32>
    %19 = arith.extui %18 : vector<1x256xi1> to vector<1x256xi32>
    %20 = arith.sitofp %19 : vector<1x256xi32> to vector<1x256xf32>
    %c240_i32 = arith.constant 240 : i32
    %21 = vector.broadcast %c240_i32 : i32 to vector<1x256xi32>
    %22 = arith.cmpi slt, %0, %21 : vector<1x256xi32>
    %23 = arith.extui %22 : vector<1x256xi1> to vector<1x256xi32>
    %24 = arith.sitofp %23 : vector<1x256xi32> to vector<1x256xf32>
    %c0_i32_4 = arith.constant 0 : i32
    %25 = vector.broadcast %c0_i32_4 : i32 to vector<1x256xi32>
    %26 = arith.cmpi sgt, %16, %25 : vector<1x256xi32>
    %27 = arith.extui %26 : vector<1x256xi1> to vector<1x256xi32>
    %28 = arith.sitofp %27 : vector<1x256xi32> to vector<1x256xf32>
    %c15_i32 = arith.constant 15 : i32
    %29 = vector.broadcast %c15_i32 : i32 to vector<1x256xi32>
    %30 = arith.cmpi slt, %16, %29 : vector<1x256xi32>
    %31 = arith.extui %30 : vector<1x256xi1> to vector<1x256xi32>
    %32 = arith.sitofp %31 : vector<1x256xi32> to vector<1x256xf32>
    %33 = arith.mulf %20, %28 : vector<1x256xf32>
    %34 = arith.mulf %20, %32 : vector<1x256xf32>
    %35 = arith.mulf %24, %28 : vector<1x256xf32>
    %36 = arith.mulf %24, %32 : vector<1x256xf32>
    %c0 = arith.constant 0 : index
    %c0_5 = arith.constant 0 : index
    %c0_6 = arith.constant 0 : index
    %37 = vector.load %arg2[%c0, %c0_5, %c0_6] : memref<3x8x24xf32, #tpu.memory_space<vmem>>, vector<3x8x24xf32>
    %c0_7 = arith.constant 0 : index
    %c0_8 = arith.constant 0 : index
    %38 = vector.load %arg3[%c0_7, %c0_8] : memref<8x1xf32, #tpu.memory_space<vmem>>, vector<8x1xf32>
    %c0_9 = arith.constant 0 : index
    %c0_10 = arith.constant 0 : index
    %c0_11 = arith.constant 0 : index
    %39 = vector.load %arg1[%c0_9, %c0_10, %c0_11] : memref<2x4x256xf32, #tpu.memory_space<vmem>>, vector<1x4x256xf32>
    %40 = vector.shape_cast %39 : vector<1x4x256xf32> to vector<4x256xf32>
    %cst = arith.constant 0.000000e+00 : f32
    %41 = vector.broadcast %cst : f32 to vector<4x256xf32>
    %42 = tpu.concatenate %40, %41 in 0 : vector<4x256xf32>, vector<4x256xf32> -> vector<8x256xf32>
    %cst_12 = arith.constant 0.000000e+00 : f32
    %43 = vector.broadcast %cst_12 : f32 to vector<8x256xf32>
    %44 = vector.extract_strided_slice %42 {offsets = [0, 239], sizes = [8, 17], strides = [1, 1]} : vector<8x256xf32> to vector<8x17xf32>
    %45 = vector.extract_strided_slice %42 {offsets = [0, 0], sizes = [8, 239], strides = [1, 1]} : vector<8x256xf32> to vector<8x239xf32>
    %46 = tpu.concatenate %44, %45 in 1 : vector<8x17xf32>, vector<8x239xf32> -> vector<8x256xf32>
    %47 = vector.broadcast %33 : vector<1x256xf32> to vector<8x256xf32>
    %48 = arith.mulf %46, %47 : vector<8x256xf32>
    %49 = vector.extract_strided_slice %42 {offsets = [0, 240], sizes = [8, 16], strides = [1, 1]} : vector<8x256xf32> to vector<8x16xf32>
    %50 = vector.extract_strided_slice %42 {offsets = [0, 0], sizes = [8, 240], strides = [1, 1]} : vector<8x256xf32> to vector<8x240xf32>
    %51 = tpu.concatenate %49, %50 in 1 : vector<8x16xf32>, vector<8x240xf32> -> vector<8x256xf32>
    %52 = vector.broadcast %20 : vector<1x256xf32> to vector<8x256xf32>
    %53 = arith.mulf %51, %52 : vector<8x256xf32>
    %54 = vector.extract_strided_slice %42 {offsets = [0, 241], sizes = [8, 15], strides = [1, 1]} : vector<8x256xf32> to vector<8x15xf32>
    %55 = vector.extract_strided_slice %42 {offsets = [0, 0], sizes = [8, 241], strides = [1, 1]} : vector<8x256xf32> to vector<8x241xf32>
    %56 = tpu.concatenate %54, %55 in 1 : vector<8x15xf32>, vector<8x241xf32> -> vector<8x256xf32>
    %57 = vector.broadcast %34 : vector<1x256xf32> to vector<8x256xf32>
    %58 = arith.mulf %56, %57 : vector<8x256xf32>
    %59 = tpu.concatenate %48, %53, %58 in 0 : vector<8x256xf32>, vector<8x256xf32>, vector<8x256xf32> -> vector<24x256xf32>
    %60 = vector.extract_strided_slice %37 {offsets = [0, 0, 0], sizes = [1, 8, 24], strides = [1, 1, 1]} : vector<3x8x24xf32> to vector<1x8x24xf32>
    %61 = vector.shape_cast %60 : vector<1x8x24xf32> to vector<8x24xf32>
    %cst_13 = arith.constant dense<0.000000e+00> : vector<8x256xf32>
    %62 = tpu.matmul %61, %59, %cst_13 {dimension_numbers = #tpu.dot_dimension_numbers<[1], [0], [0], [1], [0, 0, 1, 1], [], []>} : vector<8x24xf32>, vector<24x256xf32>, vector<8x256xf32> -> vector<8x256xf32>
    %63 = arith.addf %43, %62 : vector<8x256xf32>
    %64 = vector.extract_strided_slice %42 {offsets = [0, 255], sizes = [8, 1], strides = [1, 1]} : vector<8x256xf32> to vector<8x1xf32>
    %65 = vector.extract_strided_slice %42 {offsets = [0, 0], sizes = [8, 255], strides = [1, 1]} : vector<8x256xf32> to vector<8x255xf32>
    %66 = tpu.concatenate %64, %65 in 1 : vector<8x1xf32>, vector<8x255xf32> -> vector<8x256xf32>
    %67 = vector.broadcast %28 : vector<1x256xf32> to vector<8x256xf32>
    %68 = arith.mulf %66, %67 : vector<8x256xf32>
    %69 = vector.extract_strided_slice %42 {offsets = [0, 1], sizes = [8, 255], strides = [1, 1]} : vector<8x256xf32> to vector<8x255xf32>
    %70 = vector.extract_strided_slice %42 {offsets = [0, 0], sizes = [8, 1], strides = [1, 1]} : vector<8x256xf32> to vector<8x1xf32>
    %71 = tpu.concatenate %69, %70 in 1 : vector<8x255xf32>, vector<8x1xf32> -> vector<8x256xf32>
    %72 = vector.broadcast %32 : vector<1x256xf32> to vector<8x256xf32>
    %73 = arith.mulf %71, %72 : vector<8x256xf32>
    %74 = tpu.concatenate %68, %42, %73 in 0 : vector<8x256xf32>, vector<8x256xf32>, vector<8x256xf32> -> vector<24x256xf32>
    %75 = vector.extract_strided_slice %37 {offsets = [1, 0, 0], sizes = [1, 8, 24], strides = [1, 1, 1]} : vector<3x8x24xf32> to vector<1x8x24xf32>
    %76 = vector.shape_cast %75 : vector<1x8x24xf32> to vector<8x24xf32>
    %cst_14 = arith.constant dense<0.000000e+00> : vector<8x256xf32>
    %77 = tpu.matmul %76, %74, %cst_14 {dimension_numbers = #tpu.dot_dimension_numbers<[1], [0], [0], [1], [0, 0, 1, 1], [], []>} : vector<8x24xf32>, vector<24x256xf32>, vector<8x256xf32> -> vector<8x256xf32>
    %78 = arith.addf %63, %77 : vector<8x256xf32>
    %79 = vector.extract_strided_slice %42 {offsets = [0, 15], sizes = [8, 241], strides = [1, 1]} : vector<8x256xf32> to vector<8x241xf32>
    %80 = vector.extract_strided_slice %42 {offsets = [0, 0], sizes = [8, 15], strides = [1, 1]} : vector<8x256xf32> to vector<8x15xf32>
    %81 = tpu.concatenate %79, %80 in 1 : vector<8x241xf32>, vector<8x15xf32> -> vector<8x256xf32>
    %82 = vector.broadcast %35 : vector<1x256xf32> to vector<8x256xf32>
    %83 = arith.mulf %81, %82 : vector<8x256xf32>
    %84 = vector.extract_strided_slice %42 {offsets = [0, 16], sizes = [8, 240], strides = [1, 1]} : vector<8x256xf32> to vector<8x240xf32>
    %85 = vector.extract_strided_slice %42 {offsets = [0, 0], sizes = [8, 16], strides = [1, 1]} : vector<8x256xf32> to vector<8x16xf32>
    %86 = tpu.concatenate %84, %85 in 1 : vector<8x240xf32>, vector<8x16xf32> -> vector<8x256xf32>
    %87 = vector.broadcast %24 : vector<1x256xf32> to vector<8x256xf32>
    %88 = arith.mulf %86, %87 : vector<8x256xf32>
    %89 = vector.extract_strided_slice %42 {offsets = [0, 17], sizes = [8, 239], strides = [1, 1]} : vector<8x256xf32> to vector<8x239xf32>
    %90 = vector.extract_strided_slice %42 {offsets = [0, 0], sizes = [8, 17], strides = [1, 1]} : vector<8x256xf32> to vector<8x17xf32>
    %91 = tpu.concatenate %89, %90 in 1 : vector<8x239xf32>, vector<8x17xf32> -> vector<8x256xf32>
    %92 = vector.broadcast %36 : vector<1x256xf32> to vector<8x256xf32>
    %93 = arith.mulf %91, %92 : vector<8x256xf32>
    %94 = tpu.concatenate %83, %88, %93 in 0 : vector<8x256xf32>, vector<8x256xf32>, vector<8x256xf32> -> vector<24x256xf32>
    %95 = vector.extract_strided_slice %37 {offsets = [2, 0, 0], sizes = [1, 8, 24], strides = [1, 1, 1]} : vector<3x8x24xf32> to vector<1x8x24xf32>
    %96 = vector.shape_cast %95 : vector<1x8x24xf32> to vector<8x24xf32>
    %cst_15 = arith.constant dense<0.000000e+00> : vector<8x256xf32>
    %97 = tpu.matmul %96, %94, %cst_15 {dimension_numbers = #tpu.dot_dimension_numbers<[1], [0], [0], [1], [0, 0, 1, 1], [], []>} : vector<8x24xf32>, vector<24x256xf32>, vector<8x256xf32> -> vector<8x256xf32>
    %98 = arith.addf %78, %97 : vector<8x256xf32>
    %99 = vector.broadcast %38 : vector<8x1xf32> to vector<8x256xf32>
    %100 = arith.addf %98, %99 : vector<8x256xf32>
    %cst_16 = arith.constant 0.000000e+00 : f32
    %101 = vector.broadcast %cst_16 : f32 to vector<8x256xf32>
    %102 = arith.maximumf %100, %101 : vector<8x256xf32>
    %c0_17 = arith.constant 0 : index
    %c0_18 = arith.constant 0 : index
    %c0_19 = arith.constant 0 : index
    %103 = vector.load %arg4[%c0_17, %c0_18, %c0_19] : memref<2x8x256xf32, #tpu.memory_space<vmem>>, vector<1x8x256xf32>
    %104 = vector.shape_cast %103 : vector<1x8x256xf32> to vector<8x256xf32>
    %105 = vector.shape_cast %102 : vector<8x256xf32> to vector<1x8x256xf32>
    tpu.vector_store %arg4[%c0_17, %c0_18, %c0_19], %105 {strides = array<i32>} : memref<2x8x256xf32, #tpu.memory_space<vmem>>, vector<1x8x256xf32>,
    %c1 = arith.constant 1 : index
    %c0_20 = arith.constant 0 : index
    %c0_21 = arith.constant 0 : index
    %106 = vector.load %arg1[%c1, %c0_20, %c0_21] : memref<2x4x256xf32, #tpu.memory_space<vmem>>, vector<1x4x256xf32>
    %107 = vector.shape_cast %106 : vector<1x4x256xf32> to vector<4x256xf32>
    %cst_22 = arith.constant 0.000000e+00 : f32
    %108 = vector.broadcast %cst_22 : f32 to vector<4x256xf32>
    %109 = tpu.concatenate %107, %108 in 0 : vector<4x256xf32>, vector<4x256xf32> -> vector<8x256xf32>
    %cst_23 = arith.constant 0.000000e+00 : f32
    %110 = vector.broadcast %cst_23 : f32 to vector<8x256xf32>
    %111 = vector.extract_strided_slice %109 {offsets = [0, 239], sizes = [8, 17], strides = [1, 1]} : vector<8x256xf32> to vector<8x17xf32>
    %112 = vector.extract_strided_slice %109 {offsets = [0, 0], sizes = [8, 239], strides = [1, 1]} : vector<8x256xf32> to vector<8x239xf32>
    %113 = tpu.concatenate %111, %112 in 1 : vector<8x17xf32>, vector<8x239xf32> -> vector<8x256xf32>
    %114 = vector.broadcast %33 : vector<1x256xf32> to vector<8x256xf32>
    %115 = arith.mulf %113, %114 : vector<8x256xf32>
    %116 = vector.extract_strided_slice %109 {offsets = [0, 240], sizes = [8, 16], strides = [1, 1]} : vector<8x256xf32> to vector<8x16xf32>
    %117 = vector.extract_strided_slice %109 {offsets = [0, 0], sizes = [8, 240], strides = [1, 1]} : vector<8x256xf32> to vector<8x240xf32>
    %118 = tpu.concatenate %116, %117 in 1 : vector<8x16xf32>, vector<8x240xf32> -> vector<8x256xf32>
    %119 = vector.broadcast %20 : vector<1x256xf32> to vector<8x256xf32>
    %120 = arith.mulf %118, %119 : vector<8x256xf32>
    %121 = vector.extract_strided_slice %109 {offsets = [0, 241], sizes = [8, 15], strides = [1, 1]} : vector<8x256xf32> to vector<8x15xf32>
    %122 = vector.extract_strided_slice %109 {offsets = [0, 0], sizes = [8, 241], strides = [1, 1]} : vector<8x256xf32> to vector<8x241xf32>
    %123 = tpu.concatenate %121, %122 in 1 : vector<8x15xf32>, vector<8x241xf32> -> vector<8x256xf32>
    %124 = vector.broadcast %34 : vector<1x256xf32> to vector<8x256xf32>
    %125 = arith.mulf %123, %124 : vector<8x256xf32>
    %126 = tpu.concatenate %115, %120, %125 in 0 : vector<8x256xf32>, vector<8x256xf32>, vector<8x256xf32> -> vector<24x256xf32>
    %127 = vector.extract_strided_slice %37 {offsets = [0, 0, 0], sizes = [1, 8, 24], strides = [1, 1, 1]} : vector<3x8x24xf32> to vector<1x8x24xf32>
    %128 = vector.shape_cast %127 : vector<1x8x24xf32> to vector<8x24xf32>
    %cst_24 = arith.constant dense<0.000000e+00> : vector<8x256xf32>
    %129 = tpu.matmul %128, %126, %cst_24 {dimension_numbers = #tpu.dot_dimension_numbers<[1], [0], [0], [1], [0, 0, 1, 1], [], []>} : vector<8x24xf32>, vector<24x256xf32>, vector<8x256xf32> -> vector<8x256xf32>
    %130 = arith.addf %110, %129 : vector<8x256xf32>
    %131 = vector.extract_strided_slice %109 {offsets = [0, 255], sizes = [8, 1], strides = [1, 1]} : vector<8x256xf32> to vector<8x1xf32>
    %132 = vector.extract_strided_slice %109 {offsets = [0, 0], sizes = [8, 255], strides = [1, 1]} : vector<8x256xf32> to vector<8x255xf32>
    %133 = tpu.concatenate %131, %132 in 1 : vector<8x1xf32>, vector<8x255xf32> -> vector<8x256xf32>
    %134 = vector.broadcast %28 : vector<1x256xf32> to vector<8x256xf32>
    %135 = arith.mulf %133, %134 : vector<8x256xf32>
    %136 = vector.extract_strided_slice %109 {offsets = [0, 1], sizes = [8, 255], strides = [1, 1]} : vector<8x256xf32> to vector<8x255xf32>
    %137 = vector.extract_strided_slice %109 {offsets = [0, 0], sizes = [8, 1], strides = [1, 1]} : vector<8x256xf32> to vector<8x1xf32>
    %138 = tpu.concatenate %136, %137 in 1 : vector<8x255xf32>, vector<8x1xf32> -> vector<8x256xf32>
    %139 = vector.broadcast %32 : vector<1x256xf32> to vector<8x256xf32>
    %140 = arith.mulf %138, %139 : vector<8x256xf32>
    %141 = tpu.concatenate %135, %109, %140 in 0 : vector<8x256xf32>, vector<8x256xf32>, vector<8x256xf32> -> vector<24x256xf32>
    %142 = vector.extract_strided_slice %37 {offsets = [1, 0, 0], sizes = [1, 8, 24], strides = [1, 1, 1]} : vector<3x8x24xf32> to vector<1x8x24xf32>
    %143 = vector.shape_cast %142 : vector<1x8x24xf32> to vector<8x24xf32>
    %cst_25 = arith.constant dense<0.000000e+00> : vector<8x256xf32>
    %144 = tpu.matmul %143, %141, %cst_25 {dimension_numbers = #tpu.dot_dimension_numbers<[1], [0], [0], [1], [0, 0, 1, 1], [], []>} : vector<8x24xf32>, vector<24x256xf32>, vector<8x256xf32> -> vector<8x256xf32>
    %145 = arith.addf %130, %144 : vector<8x256xf32>
    %146 = vector.extract_strided_slice %109 {offsets = [0, 15], sizes = [8, 241], strides = [1, 1]} : vector<8x256xf32> to vector<8x241xf32>
    %147 = vector.extract_strided_slice %109 {offsets = [0, 0], sizes = [8, 15], strides = [1, 1]} : vector<8x256xf32> to vector<8x15xf32>
    %148 = tpu.concatenate %146, %147 in 1 : vector<8x241xf32>, vector<8x15xf32> -> vector<8x256xf32>
    %149 = vector.broadcast %35 : vector<1x256xf32> to vector<8x256xf32>
    %150 = arith.mulf %148, %149 : vector<8x256xf32>
    %151 = vector.extract_strided_slice %109 {offsets = [0, 16], sizes = [8, 240], strides = [1, 1]} : vector<8x256xf32> to vector<8x240xf32>
    %152 = vector.extract_strided_slice %109 {offsets = [0, 0], sizes = [8, 16], strides = [1, 1]} : vector<8x256xf32> to vector<8x16xf32>
    %153 = tpu.concatenate %151, %152 in 1 : vector<8x240xf32>, vector<8x16xf32> -> vector<8x256xf32>
    %154 = vector.broadcast %24 : vector<1x256xf32> to vector<8x256xf32>
    %155 = arith.mulf %153, %154 : vector<8x256xf32>
    %156 = vector.extract_strided_slice %109 {offsets = [0, 17], sizes = [8, 239], strides = [1, 1]} : vector<8x256xf32> to vector<8x239xf32>
    %157 = vector.extract_strided_slice %109 {offsets = [0, 0], sizes = [8, 17], strides = [1, 1]} : vector<8x256xf32> to vector<8x17xf32>
    %158 = tpu.concatenate %156, %157 in 1 : vector<8x239xf32>, vector<8x17xf32> -> vector<8x256xf32>
    %159 = vector.broadcast %36 : vector<1x256xf32> to vector<8x256xf32>
    %160 = arith.mulf %158, %159 : vector<8x256xf32>
    %161 = tpu.concatenate %150, %155, %160 in 0 : vector<8x256xf32>, vector<8x256xf32>, vector<8x256xf32> -> vector<24x256xf32>
    %162 = vector.extract_strided_slice %37 {offsets = [2, 0, 0], sizes = [1, 8, 24], strides = [1, 1, 1]} : vector<3x8x24xf32> to vector<1x8x24xf32>
    %163 = vector.shape_cast %162 : vector<1x8x24xf32> to vector<8x24xf32>
    %cst_26 = arith.constant dense<0.000000e+00> : vector<8x256xf32>
    %164 = tpu.matmul %163, %161, %cst_26 {dimension_numbers = #tpu.dot_dimension_numbers<[1], [0], [0], [1], [0, 0, 1, 1], [], []>} : vector<8x24xf32>, vector<24x256xf32>, vector<8x256xf32> -> vector<8x256xf32>
    %165 = arith.addf %145, %164 : vector<8x256xf32>
    %166 = vector.broadcast %38 : vector<8x1xf32> to vector<8x256xf32>
    %167 = arith.addf %165, %166 : vector<8x256xf32>
    %cst_27 = arith.constant 0.000000e+00 : f32
    %168 = vector.broadcast %cst_27 : f32 to vector<8x256xf32>
    %169 = arith.maximumf %167, %168 : vector<8x256xf32>
    %c1_28 = arith.constant 1 : index
    %c0_29 = arith.constant 0 : index
    %c0_30 = arith.constant 0 : index
    %170 = vector.load %arg4[%c1_28, %c0_29, %c0_30] : memref<2x8x256xf32, #tpu.memory_space<vmem>>, vector<1x8x256xf32>
    %171 = vector.shape_cast %170 : vector<1x8x256xf32> to vector<8x256xf32>
    %172 = vector.shape_cast %169 : vector<8x256xf32> to vector<1x8x256xf32>
    tpu.vector_store %arg4[%c1_28, %c0_29, %c0_30], %172 {strides = array<i32>} : memref<2x8x256xf32, #tpu.memory_space<vmem>>, vector<1x8x256xf32>,
    return
  }
  func.func @transform_0(%arg0: i32) -> (i32, i32, i32) {
    %c0_i32 = arith.constant 0 : i32
    %c0_i32_0 = arith.constant 0 : i32
    %c0_i32_1 = arith.constant 0 : i32
    return %arg0, %c0_i32, %c0_i32_0 : i32, i32, i32
  }
  func.func @transform_1(%arg0: i32) -> (i32, i32, i32) {
    %c0_i32 = arith.constant 0 : i32
    %c0_i32_0 = arith.constant 0 : i32
    %c0_i32_1 = arith.constant 0 : i32
    %c0_i32_2 = arith.constant 0 : i32
    return %c0_i32, %c0_i32_0, %c0_i32_1 : i32, i32, i32
  }
  func.func @transform_2(%arg0: i32) -> (i32, i32) {
    %c0_i32 = arith.constant 0 : i32
    %c0_i32_0 = arith.constant 0 : i32
    %c0_i32_1 = arith.constant 0 : i32
    return %c0_i32, %c0_i32_0 : i32, i32
  }
  func.func @transform_3(%arg0: i32) -> (i32, i32, i32) {
    %c0_i32 = arith.constant 0 : i32
    %c0_i32_0 = arith.constant 0 : i32
    %c0_i32_1 = arith.constant 0 : i32
    return %arg0, %c0_i32, %c0_i32_0 : i32, i32, i32
  }
}

</mosaic_0001>

<bundles_post_ra>
// kernel: dimension_transform_block_pre.1
= control target key start
LH: loop header
LB: loop body
LE: loop exit
PB: predicated region body
PF: predicated region fallthrough
CT: control target
= control target key end

     0   :  { %vm81_vm0 = vcmask 1043456   ;;  %v810_v2 = vmov 0.0   ;;  %s812_s16 = smov 127   ;;  %s813_s17 = smov 17   ;;  %v818_v9 = vmov 0   ;;  %v14_v11 = vlaneseq  ;;  %s979_s0 = inlined_call_operand.vmem [shape: f32[2,4,256], index: 0, kind: input, shape index: {}]   ;;  %s980_s2 = inlined_call_operand.vmem [shape: f32[8,1], index: 2, kind: input, shape index: {}]   ;;  %s981_s1 = inlined_call_operand.vmem [shape: f32[3,8,24], index: 1, kind: input, shape index: {}]   ;;  %s982_s3 = inlined_call_operand.vmem [shape: f32[2,8,256], index: 3, kind: output, shape index: {}]  }
   0x1   :  { %v844_v0 = vld [vmem:[%s979_s0 + $0x8] sm:$0xff]  ;;  %v849_v1 = vld [vmem:[%s979_s0] sm:$0xff]  ;;  %214 = vmatprep.mubr.f32.mxu0 %v810_v2  ;;  %546 = vmatprep.mubr.f32.mxu1 %v810_v2  ;;  %s811_s0 = smov 1   ;;  %s814_s18 = smov 16   ;;  %vm127_vm3 = vcmask 7168   ;;  %vm138_vm5 = vcmask 1039360  }
   0x2   :  { %v423_v3 = vsel %vm81_vm0, %v844_v0, 0.0  ;;  %v82_v4 = vsel %vm81_vm0, %v849_v1, 0.0  ;;  %v859_v5 = vcombine.high %v844_v0, %v844_v0  ;;  %v863_v6 = vcombine.high %v849_v1, %v849_v1  ;;  %s815_s19 = smov 15   ;;  %s816_s20 = smov 113   ;;  %807 = vset.pattern.permute.xlu0 %v818_v9  ;;  %v76_v10 = vld [vmem:[%s980_s2] sm:$0xff]  ;;  %v74_v46 = vld [vmem:[%s981_s1 + $0x8] sm:$0xff] }
   0x3   :  { %463 = vrot.lane.b32.xlu1 %v423_v3, %s811_s0  ;;  %125 = vrot.lane.b32.xlu0 %v82_v4, %s811_s0  ;;  %s817_s21 = smov 112   ;;  %s819_s22 = smov 111   ;;  %v872_v12 = vand.u32 127, %v14_v11  ;;  %vm820_vm7 = vmmov 1   ;;  %vm146_vm9 = vcmask 195584   ;;  %vm91_vm11 = vcmask 138240  }
   0x4   :  { %v424_v7 = vsel %vm81_vm0, %v859_v5, 0.0  ;;  %v83_v8 = vsel %vm81_vm0, %v863_v6, 0.0  ;;  %vm761_vm8 = vmpackc.low %vm81_vm0, %vm820_vm7  ;;  %vm103_vm12 = vcmask 130048   ;;  %vm115_vm13 = vcmask 121856  }
   0x5   :  { %v875_v13 = vadd.s32 128, %v872_v12  ;;  %v21_v14 = vand.u32 15, %v872_v12  ;;  %vm41_vm10 = vcmp.ge.s32.totalorder %v872_v12, 16  ;;  %vm299_vm15 = vcmask 924672  }
   0x6   :  { %v741_v51 = vsel %vm41_vm10, 1.0, %v810_v2  ;;  %vm311_vm0 = vcmask 916480  }
   0x7   :  { %460 = vrot.lane.b32.xlu1 %v424_v7, %s811_s0  ;;  %122 = vrot.lane.b32.xlu0 %v83_v8, %s811_s0  ;;  %v28_v15 = vand.u32 15, %v875_v13  ;;  %vm53_vm1 = vcmp.gt.s32.totalorder %v21_v14, 0  ;;  %vm59_vm6 = vcmp.lt.s32.totalorder %v21_v14, 15  ;;  %vm48_vm14 = vcmp.lt.s32.totalorder %v875_v13, 240 }
   0x8   :  { %v880_v18 = vsel %vm53_vm1, 1.0, %v810_v2  ;;  %v899_v38 = vsel %vm59_vm6, 1.0, %v810_v2  ;;  %vm323_vm1 = vcmask 908288  }
   0x9   :  { %vm54_vm2 = vcmp.gt.s32.totalorder %v28_v15, 0  ;;  %vm60_vm4 = vcmp.lt.s32.totalorder %v28_v15, 15  ;;  %v65_v55 = vmul.f32 %v880_v18, %v741_v51 }
   0xa   :  { %v883_v19 = vsel %vm54_vm2, 1.0, %v810_v2  ;;  %v890_v30 = vsel %vm60_vm4, 1.0, %v810_v2 }
   0xb   :  { %136 = vrot.lane.b32.xlu1 %v83_v8, %s812_s16  ;;  %134 = vrot.lane.b32.xlu0 %v82_v4, %s812_s16 }
   0xf   :  { %473 = vrot.lane.b32.xlu1 %v424_v7, %s812_s16  ;;  %471 = vrot.lane.b32.xlu0 %v423_v3, %s812_s16 }
  0x13   :  { %89 = vrot.lane.b32.xlu1 %v82_v4, %s813_s17  ;;  %85 = vrot.lane.b32.xlu0 %v83_v8, %s813_s17 }
  0x17   :  { %430 = vrot.lane.b32.xlu1 %v423_v3, %s813_s17  ;;  %426 = vrot.lane.b32.xlu0 %v424_v7, %s813_s17 }
  0x1b   :  { %101 = vrot.lane.b32.xlu1 %v82_v4, %s814_s18  ;;  %98 = vrot.lane.b32.xlu0 %v83_v8, %s814_s18 }
  0x1f   :  { %441 = vrot.lane.b32.xlu1 %v423_v3, %s814_s18  ;;  %438 = vrot.lane.b32.xlu0 %v424_v7, %s814_s18 }
  0x23   :  { %113 = vrot.lane.b32.xlu1 %v82_v4, %s815_s19  ;;  %110 = vrot.lane.b32.xlu0 %v83_v8, %s815_s19 }
  0x27   :  { %452 = vrot.lane.b32.xlu1 %v423_v3, %s815_s19  ;;  %449 = vrot.lane.b32.xlu0 %v424_v7, %s815_s19 }
  0x2b   :  { %297 = vrot.lane.b32.xlu1 %v83_v8, %s816_s20  ;;  %295 = vrot.lane.b32.xlu0 %v82_v4, %s816_s20 }
  0x2f   :  { %309 = vrot.lane.b32.xlu1 %v83_v8, %s817_s21  ;;  %307 = vrot.lane.b32.xlu0 %v82_v4, %s817_s21 }
  0x33   :  { %626 = vrot.lane.b32.xlu1 %v424_v7, %s816_s20  ;;  %624 = vrot.lane.b32.xlu0 %v423_v3, %s816_s20 }
  0x37   :  { %637 = vrot.lane.b32.xlu1 %v424_v7, %s817_s21  ;;  %635 = vrot.lane.b32.xlu0 %v423_v3, %s817_s21 }
  0x3b   :  { %321 = vrot.lane.b32.xlu1 %v83_v8, %s819_s22  ;;  %319 = vrot.lane.b32.xlu0 %v82_v4, %s819_s22 }
  0x3f   :  { %648 = vrot.lane.b32.xlu1 %v424_v7, %s819_s22  ;;  %646 = vrot.lane.b32.xlu0 %v423_v3, %s819_s22 }
  0x43   :  { %409 = vperm.xlu0 %807, %v76_v10   ;;  %v67_v10 = vmul.f32 %v899_v38, %v741_v51 }
  0x75   :  { %v464_v16 = vpop.permute.xlu1 %463  ;;  %v126_v17 = vpop.permute.xlu0 %125 }
  0x79   :  { %v461_v20 = vpop.permute.xlu1 %460  ;;  %v123_v21 = vpop.permute.xlu0 %122 }
  0x7a   :  { %v465_v22 = vsel %vm127_vm3, %v464_v16, %v461_v20  ;;  %v468_v23 = vsel %vm127_vm3, %v461_v20, %v464_v16  ;;  %v128_v24 = vsel %vm127_vm3, %v126_v17, %v123_v21  ;;  %v131_v25 = vsel %vm127_vm3, %v123_v21, %v126_v17 }
  0x7b   :  { %v469_v26 = vmul.f32 %v880_v18, %v468_v23  ;;  %v470_v27 = vmul.f32 %v883_v19, %v465_v22  ;;  %v132_v28 = vmul.f32 %v880_v18, %v131_v25  ;;  %v133_v29 = vmul.f32 %v883_v19, %v128_v24  ;;  %v73_v24 = vld [vmem:[%s981_s1] sm:$0xff] }
  0x7d   :  { %v137_v31 = vpop.permute.xlu1 %136  ;;  %v135_v32 = vpop.permute.xlu0 %134  ;;  %v760_v33 = vpack.c.bf16 %v863_v6, %v133_v29  ;;  %v774_v34 = vpack.c.bf16 %v859_v5, %v470_v27  ;;  %v763_v35 = vpack.c.bf16 %v849_v1, %v132_v28  ;;  %v777_v36 = vpack.c.bf16 %v844_v0, %v469_v26 }
  0x7e   :  { %v143_v37 = vsel %vm138_vm5, %v137_v31, %v135_v32  ;;  %v139_v39 = vsel %vm138_vm5, %v135_v32, %v137_v31  ;;  %v742_v32 = vsel %vm48_vm14, 1.0, %v810_v2 }
  0x7f   :  { %v145_v40 = vmul.f32 %v890_v30, %v143_v37  ;;  %762 = vmatprep.subr.msk.bf16.mxu0 %vm761_vm8, %v760_v33  ;;  %776 = vmatprep.subr.msk.bf16.mxu1 %vm761_vm8, %v774_v34  ;;  %v144_v43 = vmul.f32 %v899_v38, %v139_v39  ;;  %v70_v13 = vmul.f32 %v883_v19, %v742_v32 }
  0x80   :  { %765 = vmatpush1.bf16.msk.msra.mxu0 %vm761_vm8, %v763_v35  ;;  %779 = vmatpush1.bf16.msk.msra.mxu1 %vm761_vm8, %v777_v36 }
  0x81   :  { %v474_v41 = vpop.permute.xlu1 %473  ;;  %154 = vmatprep.subr.mxu0 %v145_v40  ;;  %v472_v42 = vpop.permute.xlu0 %471 }
  0x82   :  { %v475_v44 = vsel %vm138_vm5, %v472_v42, %v474_v41  ;;  %v479_v45 = vsel %vm138_vm5, %v474_v41, %v472_v42 }
  0x83   :  { %v480_v47 = vmul.f32 %v899_v38, %v475_v44  ;;  %v481_v48 = vmul.f32 %v890_v30, %v479_v45 }
  0x84   :  { %155 = vmatpush1.msra.mxu0 %v144_v43 }
  0x85   :  { %v90_v49 = vpop.permute.xlu1 %89  ;;  %486 = vmatprep.subr.mxu1 %v481_v48  ;;  %v86_v50 = vpop.permute.xlu0 %85  ;;  %749 = vmatmul.mubr.msk.f32.vlgmr.msra.gmra.mrb[0].mxu0 %vm146_vm9, %v74_v46 }
  0x86   :  { %487 = vmatpush1.msra.mxu1 %v480_v47  ;;  %288 = vmatprep.mubr.f32.mxu0 %v810_v2  ;;  %v92_v54 = vsel %vm91_vm11, %v90_v49, %v86_v50  ;;  %v95_v56 = vsel %vm91_vm11, %v86_v50, %v90_v49 }
  0x87   :  { %755 = vmatmul.mubr.msk.f32.vlgmr.msra.gmra.mrb[0].mxu1 %vm146_vm9, %v74_v46  ;;  %v97_v57 = vmul.f32 %v883_v19, %v92_v54  ;;  %v96_v63 = vmul.f32 %v95_v56, %v65_v55 }
  0x88   :  { %617 = vmatprep.mubr.f32.mxu1 %v810_v2 }
  0x89   :  { %v431_v52 = vpop.permute.xlu1 %430  ;;  %v427_v53 = vpop.permute.xlu0 %426 }
  0x8a   :  { %v432_v60 = vsel %vm91_vm11, %v431_v52, %v427_v53  ;;  %v435_v3 = vsel %vm91_vm11, %v427_v53, %v431_v52  ;;  %v72_v52 = vmul.f32 %v890_v30, %v742_v32 }
  0x8b   :  { %v437_v4 = vmul.f32 %v883_v19, %v432_v60  ;;  %v436_v11 = vmul.f32 %v435_v3, %v65_v55 }
  0x8d   :  { %v102_v58 = vpop.permute.xlu1 %101  ;;  %v99_v59 = vpop.permute.xlu0 %98 }
  0x8e   :  { %v104_v61 = vsel %vm103_vm12, %v102_v58, %v99_v59  ;;  %v107_v62 = vsel %vm103_vm12, %v99_v59, %v102_v58 }
  0x8f   :  { %v108_v0 = vmul.f32 %v741_v51, %v107_v62  ;;  %v766_v1 = vpack.c.bf16 %v104_v61, %v97_v57 }
  0x91   :  { %v768_v5 = vpack.c.bf16 %v108_v0, %v96_v63  ;;  %v442_v6 = vpop.permute.xlu1 %441  ;;  %767 = vmatprep.subr.bf16.mxu0 %v766_v1  ;;  %v439_v7 = vpop.permute.xlu0 %438 }
  0x92   :  { %v443_v8 = vsel %vm103_vm12, %v442_v6, %v439_v7  ;;  %v446_v9 = vsel %vm103_vm12, %v439_v7, %v442_v6 }
  0x93   :  { %v447_v12 = vmul.f32 %v741_v51, %v446_v9  ;;  %v780_v14 = vpack.c.bf16 %v443_v8, %v437_v4  ;;  %769 = vmatpush1.bf16.msra.mxu0 %v768_v5 }
  0x95   :  { %v782_v15 = vpack.c.bf16 %v447_v12, %v436_v11  ;;  %v114_v16 = vpop.permute.xlu1 %113  ;;  %781 = vmatprep.subr.bf16.mxu1 %v780_v14  ;;  %v111_v17 = vpop.permute.xlu0 %110 }
  0x96   :  { %v116_v20 = vsel %vm115_vm13, %v114_v16, %v111_v17  ;;  %v119_v21 = vsel %vm115_vm13, %v111_v17, %v114_v16 }
  0x97   :  { %v120_v22 = vmul.f32 %v119_v21, %v67_v10  ;;  %v121_v23 = vmul.f32 %v890_v30, %v116_v20  ;;  %783 = vmatpush1.bf16.msra.mxu1 %v782_v15 }
  0x99   :  { %v453_v25 = vpop.permute.xlu1 %452  ;;  %228 = vmatprep.subr.mxu0 %v121_v23  ;;  %v450_v26 = vpop.permute.xlu0 %449 }
  0x9a   :  { %v454_v27 = vsel %vm115_vm13, %v453_v25, %v450_v26  ;;  %v457_v28 = vsel %vm115_vm13, %v450_v26, %v453_v25  ;;  %229 = vmatpush1.msra.mxu0 %v120_v22 }
  0x9b   :  { %v458_v29 = vmul.f32 %v457_v28, %v67_v10  ;;  %v459_v31 = vmul.f32 %v890_v30, %v454_v27  ;;  %750 = vmatmul.mubr.msk.f32.vlgmr.msra.gmra.mrb[0].mxu0 %vm146_vm9, %v73_v24  ;;  %v75_v30 = vld [vmem:[%s981_s1 + $0x10] sm:$0xff] }
  0x9c   :  { %398 = vmatprep.mubr.f32.mxu0 %v810_v2 }
  0x9d   :  { %v298_v33 = vpop.permute.xlu1 %297  ;;  %557 = vmatprep.subr.mxu1 %v459_v31  ;;  %v296_v34 = vpop.permute.xlu0 %295 }
  0x9e   :  { %558 = vmatpush1.msra.mxu1 %v458_v29  ;;  %v304_v35 = vsel %vm299_vm15, %v298_v33, %v296_v34  ;;  %v300_v36 = vsel %vm299_vm15, %v296_v34, %v298_v33 }
  0x9f   :  { %756 = vmatmul.mubr.msk.f32.vlgmr.msra.gmra.mrb[0].mxu1 %vm146_vm9, %v73_v24  ;;  %v306_v41 = vmul.f32 %v304_v35, %v70_v13  ;;  %v305_v44 = vmul.f32 %v880_v18, %v300_v36 }
  0xa0   :  { %721 = vmatprep.mubr.f32.mxu1 %v810_v2 }
  0xa1   :  { %v310_v37 = vpop.permute.xlu1 %309  ;;  %v308_v39 = vpop.permute.xlu0 %307 }
  0xa2   :  { %v316_v40 = vsel %vm311_vm0, %v310_v37, %v308_v39  ;;  %v312_v42 = vsel %vm311_vm0, %v308_v39, %v310_v37 }
  0xa3   :  { %v318_v43 = vmul.f32 %v742_v32, %v316_v40  ;;  %v772_v47 = vpack.c.bf16 %v312_v42, %v305_v44 }
  0xa5   :  { %v627_v19 = vpop.permute.xlu1 %626  ;;  %v625_v45 = vpop.permute.xlu0 %624  ;;  %v770_v46 = vpack.c.bf16 %v318_v43, %v306_v41 }
  0xa6   :  { %v632_v48 = vsel %vm299_vm15, %v627_v19, %v625_v45  ;;  %v628_v2 = vsel %vm299_vm15, %v625_v45, %v627_v19 }
  0xa7   :  { %771 = vmatprep.subr.bf16.mxu0 %v770_v46  ;;  %v634_v53 = vmul.f32 %v632_v48, %v70_v13  ;;  %v633_v56 = vmul.f32 %v880_v18, %v628_v2 }
  0xa8   :  { %773 = vmatpush1.bf16.msra.mxu0 %v772_v47 }
  0xa9   :  { %v638_v49 = vpop.permute.xlu1 %637  ;;  %v636_v50 = vpop.permute.xlu0 %635 }
  0xaa   :  { %v643_v51 = vsel %vm311_vm0, %v638_v49, %v636_v50  ;;  %v639_v54 = vsel %vm311_vm0, %v636_v50, %v638_v49 }
  0xab   :  { %v645_v55 = vmul.f32 %v742_v32, %v643_v51  ;;  %v786_v60 = vpack.c.bf16 %v639_v54, %v633_v56 }
  0xad   :  { %v322_v57 = vpop.permute.xlu1 %321  ;;  %v320_v58 = vpop.permute.xlu0 %319  ;;  %v784_v59 = vpack.c.bf16 %v645_v55, %v634_v53 }
  0xae   :  { %v324_v61 = vsel %vm323_vm1, %v320_v58, %v322_v57  ;;  %v328_v62 = vsel %vm323_vm1, %v322_v57, %v320_v58 }
  0xaf   :  { %v329_v63 = vmul.f32 %v899_v38, %v324_v61  ;;  %v330_v0 = vmul.f32 %v328_v62, %v72_v52  ;;  %785 = vmatprep.subr.bf16.mxu1 %v784_v59 }
  0xb0   :  { %787 = vmatpush1.bf16.msra.mxu1 %v786_v60 }
  0xb1   :  { %v649_v1 = vpop.permute.xlu1 %648  ;;  %338 = vmatprep.subr.mxu0 %v330_v0  ;;  %v647_v18 = vpop.permute.xlu0 %646 }
  0xb2   :  { %v650_v3 = vsel %vm323_vm1, %v647_v18, %v649_v1  ;;  %v654_v4 = vsel %vm323_vm1, %v649_v1, %v647_v18  ;;  %339 = vmatpush1.msra.mxu0 %v329_v63 }
  0xb3   :  { %v655_v5 = vmul.f32 %v899_v38, %v650_v3  ;;  %v656_v6 = vmul.f32 %v654_v4, %v72_v52  ;;  %751 = vmatmul.mubr.msk.f32.vlgmr.msra.gmra.mrb[0].mxu0 %vm146_vm9, %v75_v30 }
  0xb5   :  { %661 = vmatprep.subr.mxu1 %v656_v6 }
  0xb6   :  { %662 = vmatpush1.msra.mxu1 %v655_v5 }
  0xb7   :  { %757 = vmatmul.mubr.msk.f32.vlgmr.msra.gmra.mrb[0].mxu1 %vm146_vm9, %v75_v30 }
  0xc2   :  { %v410_v7 = vpop.permute.xlu0 %409 }
 0x186   :  { %v400_v8 = vpop.f32.mrb[0].mxu0 }
 0x187   :  { %v412_v9 = vadd.f32 %v410_v7, %v400_v8  ;;  %v402_v10 = vpop.f32.mrb[1].mxu0 }
 0x188   :  { %v413_v11 = vadd.f32 %v410_v7, %v402_v10 }
 0x189   :  { %v414_v12 = vmax.f32 %v412_v9, 0.0 }
 0x18a   :  { %v415_v14 = vmax.f32 %v413_v11, 0.0  ;;  %v723_v15 = vpop.f32.mrb[0].mxu1 }
 0x18b   :  { %416 = vst [vmem:[%s982_s3] sm:$0xff] %v414_v12  ;;  %v730_v38 = vadd.f32 %v723_v15, %v410_v7  ;;  %v725_v16 = vpop.f32.mrb[1].mxu1 }
 0x18c   :  { %417 = vst [vmem:[%s982_s3 + $0x8] sm:$0xff] %v415_v14  ;;  %v731_v17 = vadd.f32 %v725_v16, %v410_v7 }
 0x18d   :  { %v732_v20 = vmax.f32 %v730_v38, 0.0 }
 0x18e   :  { %v733_v21 = vmax.f32 %v731_v17, 0.0 }
 0x18f   :  { %758 = vst [vmem:[%s982_s3 + $0x10] sm:$0xff] %v732_v20 }
 0x190   :  { %759 = vst [vmem:[%s982_s3 + $0x18] sm:$0xff] %v733_v21 }

</bundles_post_ra>
